<compile_context>
chip_gen: v6e
topology: v6e:2x2x1
jax: 0.10.0
libtpu: 0.0.40
codegen_flags: <defaults>
</compile_context>

<pallas_src>
import math
import numpy as np
import jax
import jax.numpy as jnp
from jax.experimental import pallas as pl
from jax.experimental.pallas import tpu as pltpu

IN_C, OUT_C = 4, 8
H = W = 16
HB, WB = H // 2, W // 2            # spatial dims after the stride-2 stage
ROOT_DIM = 2 * OUT_C + IN_C        # level_root=True -> 20

LANE_PACK = 2                      # images packed side-by-side along lanes
MAX_SUB_BATCH = 8                  # image-pairs stacked along sublanes / step

LANE_ACT = LANE_PACK * WB * OUT_C  # 128 activation lanes
LANE_IN = LANE_PACK * WB * IN_C    # 64  pooled-input lanes
LANE_C1 = LANE_PACK * 3 * W * IN_C # 384 fused conv1-tap lanes (K dimension)


# ----------------------------------------------------------------------------
# Fused Pallas kernel: whole Tree forward for LANE_PACK * b_sub images / step.
# ----------------------------------------------------------------------------
def _tree_kernel(pool_ref, c1_ref,
                 w1_ref, w2_ref, w3_ref, w4_ref,
                 wproj_ref, wra_ref, wrb_ref, wrc_ref,
                 bias_ref, mask_ref,
                 out_ref):
    """Refs (S = b_sub*HB sublanes; lanes hold LANE_PACK images side by side):
      pool_ref : (1, 4, S, LANE_IN)      bf16  4 shifted slabs of the 2x2 max-pool
      c1_ref   : (1, S, LANE_C1)         bf16  fused row taps (dh=0..2), conv1 s=2
      w1_ref   : (LANE_C1, LANE_ACT)     bf16  fused-K banded block-diag conv1 w
      w2..w4   : (3, LANE_ACT, LANE_ACT) bf16  banded block-diag 3x3 s=1 weights
      wproj    : (LANE_IN, LANE_ACT)     bf16  block-diag 1x1 projection
      wra/b/c  : root 1x1 split over [x2 | x1 | bottom] channel chunks
      bias_ref : (6, 1, LANE_ACT)        f32   BN bias (scale folded into weights)
      mask_ref : (2, S, LANE_ACT)        f32   zero rows at per-image H boundaries
      out_ref  : (1, S, LANE_ACT)        f32
    """
    f32, bf16 = jnp.float32, jnp.bfloat16

    def affine(acc, j, residual=None, relu=True):
        y = acc + bias_ref[j]
        if residual is not None:
            y = y + residual
        if relu:
            y = jnp.maximum(y, 0.0)
        return y

    # --- downsample: MaxPool2d(2,2) = elementwise max of 4 window slabs -----
    # (exact in bf16: max commutes with the monotone bf16 rounding)
    bottom_b = jnp.maximum(jnp.maximum(pool_ref[0, 0], pool_ref[0, 1]),
                           jnp.maximum(pool_ref[0, 2], pool_ref[0, 3]))

    # --- project: 1x1 conv + BN (no ReLU) -> residual for tree1 -------------
    residual = affine(
        jnp.dot(bottom_b, wproj_ref[...], preferred_element_type=f32),
        0, relu=False)

    # --- tree1.conv1: 3x3 stride-2 conv as ONE fused-K matmul (+BN+ReLU) ----
    h = affine(jnp.dot(c1_ref[0], w1_ref[...], preferred_element_type=f32), 1)

    mask_up = mask_ref[0]
    mask_dn = mask_ref[1]
    n_rows = h.shape[0]

    def conv3x3_s1(act, w_ref):
        # W taps / stride / W padding live in the banded weight; H taps are
        # sublane rolls (XLU) with per-image boundary rows masked to zero,
        # which implements the H zero-padding.
        act_b = act.astype(bf16)
        up_b = (pltpu.roll(act, 1, axis=0) * mask_up).astype(bf16)          # act[h-1]
        dn_b = (pltpu.roll(act, n_rows - 1, axis=0) * mask_dn).astype(bf16)  # act[h+1]
        a = jnp.dot(up_b, w_ref[0], preferred_element_type=f32)
        a = a + jnp.dot(act_b, w_ref[1], preferred_element_type=f32)
        a = a + jnp.dot(dn_b, w_ref[2], preferred_element_type=f32)
        return a

    x1 = affine(conv3x3_s1(h, w2_ref), 2, residual=residual)   # tree1 output
    g = affine(conv3x3_s1(x1, w3_ref), 3)
    x2 = affine(conv3x3_s1(g, w4_ref), 4, residual=x1)          # tree2 output

    # --- root: 1x1 conv over cat([x2, x1, bottom]) via split weights --------
    acc = jnp.dot(x2.astype(bf16), wra_ref[...], preferred_element_type=f32)
    acc = acc + jnp.dot(x1.astype(bf16), wrb_ref[...], preferred_element_type=f32)
    acc = acc + jnp.dot(bottom_b, wrc_ref[...], preferred_element_type=f32)
    out_ref[0] = affine(acc, 5)


# ----------------------------------------------------------------------------
# Parameter preparation: banded matrices (W taps / stride / pad folded in),
# BN scale folded into columns, block-diagonal lane packing for P images.
# ----------------------------------------------------------------------------
def _banded(w_kkio, dh, wi_len, wo_len, stride, pad):
    """(wi_len*ci, wo_len*co) matrix applying kernel row `dh` along W."""
    k = w_kkio.shape[0]
    ci, co = w_kkio.shape[2], w_kkio.shape[3]
    w_np = np.asarray(w_kkio, np.float32)
    m = np.zeros((wi_len * ci, wo_len * co), np.float32)
    for wo in range(wo_len):
        for dw in range(k):
            wi = stride * wo + dw - pad
            if 0 <= wi < wi_len:
                m[wi * ci:(wi + 1) * ci, wo * co:(wo + 1) * co] = w_np[dh, dw]
    return m


def _lane_pack(m):
    """Repeat `m` LANE_PACK times along the block diagonal (one block per
    lane-packed image)."""
    k, n = m.shape
    out = np.zeros((LANE_PACK * k, LANE_PACK * n), np.float32)
    for i in range(LANE_PACK):
        out[i * k:(i + 1) * k, i * n:(i + 1) * n] = m
    return out


def prepare_kernel_params(p):
    w1 = np.asarray(p["t1_w1"]).reshape(3, 3, IN_C, OUT_C)
    w2 = np.asarray(p["t1_w2"]).reshape(3, 3, OUT_C, OUT_C)
    w3 = np.asarray(p["t2_w1"]).reshape(3, 3, OUT_C, OUT_C)
    w4 = np.asarray(p["t2_w2"]).reshape(3, 3, OUT_C, OUT_C)
    wproj = np.asarray(p["proj_w"]).reshape(1, 1, IN_C, OUT_C)
    wroot = np.asarray(p["root_w"]).reshape(1, 1, ROOT_DIM, OUT_C)

    def fold(m, scale):
        # y = (x@W)*s + b == x@(W*diag(s)) + b ; columns are (wb, co)-ordered.
        return m * np.tile(np.asarray(scale, np.float32), WB)[None, :]

    def pack(m):
        return jnp.asarray(_lane_pack(m), jnp.bfloat16)

    def pack3(w_kkio, scale):
        return jnp.asarray(
            np.stack([_lane_pack(fold(_banded(w_kkio, dh, WB, WB, 1, 1), scale))
                      for dh in range(3)]), jnp.bfloat16)

    # tree1.conv1: stack the 3 kernel-row bands along K (matches fused c1 taps)
    w1_fused = np.concatenate([_banded(w1, dh, W, WB, 2, 1) for dh in range(3)],
                              axis=0)                                # (3*W*Ci, WB*Co)

    kp = {
        "w1": pack(fold(w1_fused, p["t1_s1"])),
        "w2": pack3(w2, p["t1_s2"]),
        "w3": pack3(w3, p["t2_s1"]),
        "w4": pack3(w4, p["t2_s2"]),
        "wproj": pack(fold(_banded(wproj, 0, WB, WB, 1, 0), p["proj_s"])),
        "wra": pack(fold(_banded(wroot[:, :, :OUT_C, :], 0, WB, WB, 1, 0), p["root_s"])),
        "wrb": pack(fold(_banded(wroot[:, :, OUT_C:2 * OUT_C, :], 0, WB, WB, 1, 0), p["root_s"])),
        "wrc": pack(fold(_banded(wroot[:, :, 2 * OUT_C:, :], 0, WB, WB, 1, 0), p["root_s"])),
    }
    biases = np.stack([np.tile(np.asarray(p[k], np.float32), WB * LANE_PACK) for k in
                       ("proj_b", "t1_b1", "t1_b2", "t2_b1", "t2_b2", "root_b")])
    kp["biases"] = jnp.asarray(biases[:, None, :], jnp.float32)      # (6,1,LANE_ACT)
    return kp


# ----------------------------------------------------------------------------
# Plain-JAX layout glue on the network input only.
# ----------------------------------------------------------------------------
def _pick_sub_batch(n):
    # image-pairs stacked along sublanes per grid step; keep grid length >= 2
    # when the batch allows so v7x's two TensorCores both get work.
    return max(1, min(MAX_SUB_BATCH, -(-n // (2 * LANE_PACK))))


def _tree_forward(x_nchw, kp):
    x = jnp.transpose(x_nchw, (0, 2, 3, 1)).astype(jnp.float32)     # NCHW -> NHWC
    n = x.shape[0]
    b_sub = _pick_sub_batch(n)
    group = LANE_PACK * b_sub                                        # images / step
    grid_n = -(-n // group)
    n_pad = grid_n * group
    if n_pad != n:
        x = jnp.pad(x, ((0, n_pad - n), (0, 0), (0, 0), (0, 0)))
    sub = b_sub * HB

    # 2x2 max-pool window slabs, bf16, lane-packed + sublane-batched
    taps = [x[:, dh::2, dw::2, :].reshape(n_pad, HB, WB * IN_C)
            for dh in range(2) for dw in range(2)]
    pool = jnp.stack(taps, axis=1).astype(jnp.bfloat16)              # (Np,4,HB,WB*Ci)
    pool = pool.reshape(grid_n, b_sub, LANE_PACK, 4, HB, WB * IN_C)
    pool = jnp.transpose(pool, (0, 3, 1, 4, 2, 5)).reshape(grid_n, 4, sub, LANE_IN)

    # conv1 row taps (dh=0..2) concatenated along lanes (fused K), bf16
    xr = x.reshape(n_pad, H, W * IN_C)
    xr_pad = jnp.pad(xr, ((0, 0), (1, 0), (0, 0)))
    c1 = jnp.concatenate([xr_pad[:, dh:dh + 2 * HB:2, :] for dh in range(3)],
                         axis=-1).astype(jnp.bfloat16)               # (Np,HB,3*W*Ci)
    c1 = c1.reshape(grid_n, b_sub, LANE_PACK, HB, 3 * W * IN_C)
    c1 = jnp.transpose(c1, (0, 1, 3, 2, 4)).reshape(grid_n, sub, LANE_C1)

    # per-image boundary masks for the sublane rolls (host-built constants)
    rows = np.arange(sub)
    m_up = (rows % HB != 0).astype(np.float32)
    m_dn = (rows % HB != HB - 1).astype(np.float32)
    masks = jnp.asarray(np.stack([m_up, m_dn])[:, :, None] *
                        np.ones((1, 1, LANE_ACT), np.float32), jnp.float32)

    out = pl.pallas_call(
        _tree_kernel,
        out_shape=jax.ShapeDtypeStruct((grid_n, sub, LANE_ACT), jnp.float32),
        grid=(grid_n,),
        in_specs=[
            pl.BlockSpec((1, 4, sub, LANE_IN), lambda i: (i, 0, 0, 0)),   # pool slabs
            pl.BlockSpec((1, sub, LANE_C1), lambda i: (i, 0, 0)),         # conv1 taps
            pl.BlockSpec((LANE_C1, LANE_ACT), lambda i: (0, 0)),          # w1 fused
            pl.BlockSpec((3, LANE_ACT, LANE_ACT), lambda i: (0, 0, 0)),   # w2
            pl.BlockSpec((3, LANE_ACT, LANE_ACT), lambda i: (0, 0, 0)),   # w3
            pl.BlockSpec((3, LANE_ACT, LANE_ACT), lambda i: (0, 0, 0)),   # w4
            pl.BlockSpec((LANE_IN, LANE_ACT), lambda i: (0, 0)),          # project 1x1
            pl.BlockSpec((LANE_ACT, LANE_ACT), lambda i: (0, 0)),         # root (x2)
            pl.BlockSpec((LANE_ACT, LANE_ACT), lambda i: (0, 0)),         # root (x1)
            pl.BlockSpec((LANE_IN, LANE_ACT), lambda i: (0, 0)),          # root (bottom)
            pl.BlockSpec((6, 1, LANE_ACT), lambda i: (0, 0, 0)),          # BN biases
            pl.BlockSpec((2, sub, LANE_ACT), lambda i: (0, 0, 0)),        # roll masks
        ],
        out_specs=pl.BlockSpec((1, sub, LANE_ACT), lambda i: (i, 0, 0)),
        compiler_params=pltpu.CompilerParams(
            dimension_semantics=("parallel",),
            vmem_limit_bytes=32 * 1024 * 1024,
        ),
    )(pool, c1, kp["w1"], kp["w2"], kp["w3"], kp["w4"],
      kp["wproj"], kp["wra"], kp["wrb"], kp["wrc"], kp["biases"], masks)

    # unpack (grid, sub, LANE_ACT) -> (N, Co, HB, WB)
    out = out.reshape(grid_n, b_sub, HB, LANE_PACK, WB, OUT_C)
    out = jnp.transpose(out, (0, 1, 3, 2, 4, 5)).reshape(n_pad, HB, WB, OUT_C)
    return jnp.transpose(out[:n], (0, 3, 1, 2))                      # NHWC -> NCHW


tree_forward = jax.jit(_tree_forward)


# ----------------------------------------------------------------------------
# Parameters (deterministic, synthetic; BN folded to inference scale/bias)
# ----------------------------------------------------------------------------
def _conv_w(key, k, ci, co):
    std = math.sqrt(2.0 / (k * k * ci))
    return (std * jax.random.normal(key, (k * k, ci, co))).astype(jnp.float32)


def _bn(key, c):
    k1, k2, k3, k4 = jax.random.split(key, 4)
    gamma = 1.0 + 0.1 * jax.random.normal(k1, (c,))
    beta = 0.1 * jax.random.normal(k2, (c,))
    mean = 0.1 * jax.random.normal(k3, (c,))
    var = 1.0 + 0.1 * jax.random.uniform(k4, (c,))
    scale = gamma / jnp.sqrt(var + 1e-5)
    bias = beta - mean * scale
    return scale.astype(jnp.float32), bias.astype(jnp.float32)


def init_params(key):
    ks = jax.random.split(key, 12)
    p = {}
    p["proj_w"] = _conv_w(ks[0], 1, IN_C, OUT_C)
    p["proj_s"], p["proj_b"] = _bn(ks[1], OUT_C)
    p["t1_w1"] = _conv_w(ks[2], 3, IN_C, OUT_C)
    p["t1_s1"], p["t1_b1"] = _bn(ks[3], OUT_C)
    p["t1_w2"] = _conv_w(ks[4], 3, OUT_C, OUT_C)
    p["t1_s2"], p["t1_b2"] = _bn(ks[5], OUT_C)
    p["t2_w1"] = _conv_w(ks[6], 3, OUT_C, OUT_C)
    p["t2_s1"], p["t2_b1"] = _bn(ks[7], OUT_C)
    p["t2_w2"] = _conv_w(ks[8], 3, OUT_C, OUT_C)
    p["t2_s2"], p["t2_b2"] = _bn(ks[9], OUT_C)
    p["root_w"] = _conv_w(ks[10], 1, ROOT_DIM, OUT_C)
    p["root_s"], p["root_b"] = _bn(ks[11], OUT_C)
    return p


# ----------------------------------------------------------------------------
# Pure-JAX reference: same inference-mode BN fold (scale baked into the conv
# weight before the bf16 cast, exactly like the kernel), bf16 operands / f32
# accumulation, so only summation order differs.
# ----------------------------------------------------------------------------
def _ref_conv_bn(x, w_hwio, scale, bias, stride, pad, residual=None, relu=True):
    w_scaled = (w_hwio * scale.reshape(1, 1, 1, -1)).astype(jnp.bfloat16)
    y = jax.lax.conv_general_dilated(
        x.astype(jnp.bfloat16), w_scaled,
        (stride, stride), [(pad, pad), (pad, pad)],
        dimension_numbers=("NHWC", "HWIO", "NHWC"),
        preferred_element_type=jnp.float32)
    y = y + bias
    if residual is not None:
        y = y + residual
    if relu:
        y = jnp.maximum(y, 0.0)
    return y


def tree_forward_ref(x_nchw, p):
    x = jnp.transpose(x_nchw, (0, 2, 3, 1)).astype(jnp.float32)
    bottom = jax.lax.reduce_window(x, -jnp.inf, jax.lax.max,
                                   (1, 2, 2, 1), (1, 2, 2, 1), "VALID")
    residual = _ref_conv_bn(bottom, p["proj_w"].reshape(1, 1, IN_C, OUT_C),
                            p["proj_s"], p["proj_b"], 1, 0, relu=False)
    h = _ref_conv_bn(x, p["t1_w1"].reshape(3, 3, IN_C, OUT_C),
                     p["t1_s1"], p["t1_b1"], 2, 1)
    x1 = _ref_conv_bn(h, p["t1_w2"].reshape(3, 3, OUT_C, OUT_C),
                      p["t1_s2"], p["t1_b2"], 1, 1, residual=residual)
    g = _ref_conv_bn(x1, p["t2_w1"].reshape(3, 3, OUT_C, OUT_C),
                     p["t2_s1"], p["t2_b1"], 1, 1)
    x2 = _ref_conv_bn(g, p["t2_w2"].reshape(3, 3, OUT_C, OUT_C),
                      p["t2_s2"], p["t2_b2"], 1, 1, residual=x1)
    cat = jnp.concatenate([x2, x1, bottom], axis=-1)
    out = _ref_conv_bn(cat, p["root_w"].reshape(1, 1, ROOT_DIM, OUT_C),
                       p["root_s"], p["root_b"], 1, 0)
    return jnp.transpose(out, (0, 3, 1, 2))


# ----------------------------------------------------------------------------
if __name__ == "__main__":
    key = jax.random.PRNGKey(0)
    kx, kparam = jax.random.split(key)
    x = jax.random.normal(kx, (2, IN_C, H, W), jnp.float32)   # NCHW, like PyTorch
    params = init_params(kparam)
    kernel_params = prepare_kernel_params(params)

    out = jax.block_until_ready(tree_forward(x, kernel_params))
    assert out.shape == (2, OUT_C, HB, WB), out.shape

    ref = jax.block_until_ready(tree_forward_ref(x, params))
    np.testing.assert_allclose(np.asarray(out), np.asarray(ref), rtol=5e-3, atol=1e-2)

    print("KERNEL_OK")
</pallas_src>

<mosaic_0001>
module attributes {stable_mosaic.version = 11 : i64} {
  func.func @_tree_kernel(%arg0: i32, %arg1: memref<1x4x8x64xbf16, #tpu.memory_space<vmem>>, %arg2: memref<1x8x384xbf16, #tpu.memory_space<vmem>>, %arg3: memref<384x128xbf16, #tpu.memory_space<vmem>>, %arg4: memref<3x128x128xbf16, #tpu.memory_space<vmem>>, %arg5: memref<3x128x128xbf16, #tpu.memory_space<vmem>>, %arg6: memref<3x128x128xbf16, #tpu.memory_space<vmem>>, %arg7: memref<64x128xbf16, #tpu.memory_space<vmem>>, %arg8: memref<128x128xbf16, #tpu.memory_space<vmem>>, %arg9: memref<128x128xbf16, #tpu.memory_space<vmem>>, %arg10: memref<64x128xbf16, #tpu.memory_space<vmem>>, %arg11: memref<6x1x128xf32, #tpu.memory_space<vmem>>, %arg12: memref<2x8x128xf32, #tpu.memory_space<vmem>>, %arg13: memref<1x8x128xf32, #tpu.memory_space<vmem>>) attributes {dimension_semantics = [#tpu.dimension_semantics<parallel>], iteration_bounds = array<i64: 1>, scalar_prefetch = 0 : i64, scratch_operands = 0 : i64, tpu.core_type = #tpu.core_type<tc>, window_params = [{transform_indices = @transform_0, window_bounds = array<i64: 1, 4, 8, 64>}, {transform_indices = @transform_1, window_bounds = array<i64: 1, 8, 384>}, {pipeline_mode = #tpu.pipeline_mode<synchronous>, transform_indices = @transform_2, window_bounds = array<i64: 384, 128>}, {pipeline_mode = #tpu.pipeline_mode<synchronous>, transform_indices = @transform_3, window_bounds = array<i64: 3, 128, 128>}, {pipeline_mode = #tpu.pipeline_mode<synchronous>, transform_indices = @transform_4, window_bounds = array<i64: 3, 128, 128>}, {pipeline_mode = #tpu.pipeline_mode<synchronous>, transform_indices = @transform_5, window_bounds = array<i64: 3, 128, 128>}, {pipeline_mode = #tpu.pipeline_mode<synchronous>, transform_indices = @transform_6, window_bounds = array<i64: 64, 128>}, {pipeline_mode = #tpu.pipeline_mode<synchronous>, transform_indices = @transform_7, window_bounds = array<i64: 128, 128>}, {pipeline_mode = #tpu.pipeline_mode<synchronous>, transform_indices = @transform_8, window_bounds = array<i64: 128, 128>}, {pipeline_mode = #tpu.pipeline_mode<synchronous>, transform_indices = @transform_9, window_bounds = array<i64: 64, 128>}, {pipeline_mode = #tpu.pipeline_mode<synchronous>, transform_indices = @transform_10, window_bounds = array<i64: 6, 1, 128>}, {pipeline_mode = #tpu.pipeline_mode<synchronous>, transform_indices = @transform_11, window_bounds = array<i64: 2, 8, 128>}, {transform_indices = @transform_12, window_bounds = array<i64: 1, 8, 128>}]} {
    %c0 = arith.constant 0 : index
    %c0_0 = arith.constant 0 : index
    %c0_1 = arith.constant 0 : index
    %c0_2 = arith.constant 0 : index
    %0 = vector.load %arg1[%c0, %c0_0, %c0_1, %c0_2] : memref<1x4x8x64xbf16, #tpu.memory_space<vmem>>, vector<1x1x8x64xbf16>
    %1 = vector.shape_cast %0 : vector<1x1x8x64xbf16> to vector<8x64xbf16>
    %c0_3 = arith.constant 0 : index
    %c1 = arith.constant 1 : index
    %c0_4 = arith.constant 0 : index
    %c0_5 = arith.constant 0 : index
    %2 = vector.load %arg1[%c0_3, %c1, %c0_4, %c0_5] : memref<1x4x8x64xbf16, #tpu.memory_space<vmem>>, vector<1x1x8x64xbf16>
    %3 = vector.shape_cast %2 : vector<1x1x8x64xbf16> to vector<8x64xbf16>
    %4 = arith.maximumf %1, %3 : vector<8x64xbf16>
    %c0_6 = arith.constant 0 : index
    %c2 = arith.constant 2 : index
    %c0_7 = arith.constant 0 : index
    %c0_8 = arith.constant 0 : index
    %5 = vector.load %arg1[%c0_6, %c2, %c0_7, %c0_8] : memref<1x4x8x64xbf16, #tpu.memory_space<vmem>>, vector<1x1x8x64xbf16>
    %6 = vector.shape_cast %5 : vector<1x1x8x64xbf16> to vector<8x64xbf16>
    %c0_9 = arith.constant 0 : index
    %c3 = arith.constant 3 : index
    %c0_10 = arith.constant 0 : index
    %c0_11 = arith.constant 0 : index
    %7 = vector.load %arg1[%c0_9, %c3, %c0_10, %c0_11] : memref<1x4x8x64xbf16, #tpu.memory_space<vmem>>, vector<1x1x8x64xbf16>
    %8 = vector.shape_cast %7 : vector<1x1x8x64xbf16> to vector<8x64xbf16>
    %9 = arith.maximumf %6, %8 : vector<8x64xbf16>
    %10 = arith.maximumf %4, %9 : vector<8x64xbf16>
    %c0_12 = arith.constant 0 : index
    %c0_13 = arith.constant 0 : index
    %11 = vector.load %arg7[%c0_12, %c0_13] : memref<64x128xbf16, #tpu.memory_space<vmem>>, vector<64x128xbf16>
    %cst = arith.constant dense<0.000000e+00> : vector<8x128xf32>
    %12 = tpu.matmul %10, %11, %cst {dimension_numbers = #tpu.dot_dimension_numbers<[1], [0], [0], [1], [0, 0, 1, 1], [], []>} : vector<8x64xbf16>, vector<64x128xbf16>, vector<8x128xf32> -> vector<8x128xf32>
    %c0_14 = arith.constant 0 : index
    %c0_15 = arith.constant 0 : index
    %c0_16 = arith.constant 0 : index
    %13 = vector.load %arg11[%c0_14, %c0_15, %c0_16] : memref<6x1x128xf32, #tpu.memory_space<vmem>>, vector<1x1x128xf32>
    %14 = vector.shape_cast %13 : vector<1x1x128xf32> to vector<1x128xf32>
    %15 = vector.broadcast %14 : vector<1x128xf32> to vector<8x128xf32>
    %16 = arith.addf %12, %15 : vector<8x128xf32>
    %c0_17 = arith.constant 0 : index
    %c0_18 = arith.constant 0 : index
    %c0_19 = arith.constant 0 : index
    %17 = vector.load %arg2[%c0_17, %c0_18, %c0_19] : memref<1x8x384xbf16, #tpu.memory_space<vmem>>, vector<1x8x384xbf16>
    %18 = vector.shape_cast %17 : vector<1x8x384xbf16> to vector<8x384xbf16>
    %c0_20 = arith.constant 0 : index
    %c0_21 = arith.constant 0 : index
    %19 = vector.load %arg3[%c0_20, %c0_21] : memref<384x128xbf16, #tpu.memory_space<vmem>>, vector<384x128xbf16>
    %cst_22 = arith.constant dense<0.000000e+00> : vector<8x128xf32>
    %20 = tpu.matmul %18, %19, %cst_22 {dimension_numbers = #tpu.dot_dimension_numbers<[1], [0], [0], [1], [0, 0, 1, 1], [], []>} : vector<8x384xbf16>, vector<384x128xbf16>, vector<8x128xf32> -> vector<8x128xf32>
    %c1_23 = arith.constant 1 : index
    %c0_24 = arith.constant 0 : index
    %c0_25 = arith.constant 0 : index
    %21 = vector.load %arg11[%c1_23, %c0_24, %c0_25] : memref<6x1x128xf32, #tpu.memory_space<vmem>>, vector<1x1x128xf32>
    %22 = vector.shape_cast %21 : vector<1x1x128xf32> to vector<1x128xf32>
    %23 = vector.broadcast %22 : vector<1x128xf32> to vector<8x128xf32>
    %24 = arith.addf %20, %23 : vector<8x128xf32>
    %cst_26 = arith.constant 0.000000e+00 : f32
    %25 = vector.broadcast %cst_26 : f32 to vector<8x128xf32>
    %26 = arith.maximumf %24, %25 : vector<8x128xf32>
    %c0_27 = arith.constant 0 : index
    %c0_28 = arith.constant 0 : index
    %c0_29 = arith.constant 0 : index
    %27 = vector.load %arg12[%c0_27, %c0_28, %c0_29] : memref<2x8x128xf32, #tpu.memory_space<vmem>>, vector<1x8x128xf32>
    %28 = vector.shape_cast %27 : vector<1x8x128xf32> to vector<8x128xf32>
    %c1_30 = arith.constant 1 : index
    %c0_31 = arith.constant 0 : index
    %c0_32 = arith.constant 0 : index
    %29 = vector.load %arg12[%c1_30, %c0_31, %c0_32] : memref<2x8x128xf32, #tpu.memory_space<vmem>>, vector<1x8x128xf32>
    %30 = vector.shape_cast %29 : vector<1x8x128xf32> to vector<8x128xf32>
    %31 = arith.truncf %26 : vector<8x128xf32> to vector<8x128xbf16>
    %c1_i32 = arith.constant 1 : i32
    %32 = tpu.dynamic_rotate %26 by %c1_i32 dim 0 : vector<8x128xf32>, i32 -> vector<8x128xf32>
    %33 = arith.mulf %32, %28 : vector<8x128xf32>
    %34 = arith.truncf %33 : vector<8x128xf32> to vector<8x128xbf16>
    %c7_i32 = arith.constant 7 : i32
    %35 = tpu.dynamic_rotate %26 by %c7_i32 dim 0 : vector<8x128xf32>, i32 -> vector<8x128xf32>
    %36 = arith.mulf %35, %30 : vector<8x128xf32>
    %37 = arith.truncf %36 : vector<8x128xf32> to vector<8x128xbf16>
    %c0_33 = arith.constant 0 : index
    %c0_34 = arith.constant 0 : index
    %c0_35 = arith.constant 0 : index
    %38 = vector.load %arg4[%c0_33, %c0_34, %c0_35] : memref<3x128x128xbf16, #tpu.memory_space<vmem>>, vector<1x128x128xbf16>
    %39 = vector.shape_cast %38 : vector<1x128x128xbf16> to vector<128x128xbf16>
    %cst_36 = arith.constant dense<0.000000e+00> : vector<8x128xf32>
    %40 = tpu.matmul %34, %39, %cst_36 {dimension_numbers = #tpu.dot_dimension_numbers<[1], [0], [0], [1], [0, 0, 1, 1], [], []>} : vector<8x128xbf16>, vector<128x128xbf16>, vector<8x128xf32> -> vector<8x128xf32>
    %c1_37 = arith.constant 1 : index
    %c0_38 = arith.constant 0 : index
    %c0_39 = arith.constant 0 : index
    %41 = vector.load %arg4[%c1_37, %c0_38, %c0_39] : memref<3x128x128xbf16, #tpu.memory_space<vmem>>, vector<1x128x128xbf16>
    %42 = vector.shape_cast %41 : vector<1x128x128xbf16> to vector<128x128xbf16>
    %cst_40 = arith.constant dense<0.000000e+00> : vector<8x128xf32>
    %43 = tpu.matmul %31, %42, %cst_40 {dimension_numbers = #tpu.dot_dimension_numbers<[1], [0], [0], [1], [0, 0, 1, 1], [], []>} : vector<8x128xbf16>, vector<128x128xbf16>, vector<8x128xf32> -> vector<8x128xf32>
    %44 = arith.addf %40, %43 : vector<8x128xf32>
    %c2_41 = arith.constant 2 : index
    %c0_42 = arith.constant 0 : index
    %c0_43 = arith.constant 0 : index
    %45 = vector.load %arg4[%c2_41, %c0_42, %c0_43] : memref<3x128x128xbf16, #tpu.memory_space<vmem>>, vector<1x128x128xbf16>
    %46 = vector.shape_cast %45 : vector<1x128x128xbf16> to vector<128x128xbf16>
    %cst_44 = arith.constant dense<0.000000e+00> : vector<8x128xf32>
    %47 = tpu.matmul %37, %46, %cst_44 {dimension_numbers = #tpu.dot_dimension_numbers<[1], [0], [0], [1], [0, 0, 1, 1], [], []>} : vector<8x128xbf16>, vector<128x128xbf16>, vector<8x128xf32> -> vector<8x128xf32>
    %48 = arith.addf %44, %47 : vector<8x128xf32>
    %c2_45 = arith.constant 2 : index
    %c0_46 = arith.constant 0 : index
    %c0_47 = arith.constant 0 : index
    %49 = vector.load %arg11[%c2_45, %c0_46, %c0_47] : memref<6x1x128xf32, #tpu.memory_space<vmem>>, vector<1x1x128xf32>
    %50 = vector.shape_cast %49 : vector<1x1x128xf32> to vector<1x128xf32>
    %51 = vector.broadcast %50 : vector<1x128xf32> to vector<8x128xf32>
    %52 = arith.addf %48, %51 : vector<8x128xf32>
    %53 = arith.addf %52, %16 : vector<8x128xf32>
    %cst_48 = arith.constant 0.000000e+00 : f32
    %54 = vector.broadcast %cst_48 : f32 to vector<8x128xf32>
    %55 = arith.maximumf %53, %54 : vector<8x128xf32>
    %56 = arith.truncf %55 : vector<8x128xf32> to vector<8x128xbf16>
    %c1_i32_49 = arith.constant 1 : i32
    %57 = tpu.dynamic_rotate %55 by %c1_i32_49 dim 0 : vector<8x128xf32>, i32 -> vector<8x128xf32>
    %58 = arith.mulf %57, %28 : vector<8x128xf32>
    %59 = arith.truncf %58 : vector<8x128xf32> to vector<8x128xbf16>
    %c7_i32_50 = arith.constant 7 : i32
    %60 = tpu.dynamic_rotate %55 by %c7_i32_50 dim 0 : vector<8x128xf32>, i32 -> vector<8x128xf32>
    %61 = arith.mulf %60, %30 : vector<8x128xf32>
    %62 = arith.truncf %61 : vector<8x128xf32> to vector<8x128xbf16>
    %c0_51 = arith.constant 0 : index
    %c0_52 = arith.constant 0 : index
    %c0_53 = arith.constant 0 : index
    %63 = vector.load %arg5[%c0_51, %c0_52, %c0_53] : memref<3x128x128xbf16, #tpu.memory_space<vmem>>, vector<1x128x128xbf16>
    %64 = vector.shape_cast %63 : vector<1x128x128xbf16> to vector<128x128xbf16>
    %cst_54 = arith.constant dense<0.000000e+00> : vector<8x128xf32>
    %65 = tpu.matmul %59, %64, %cst_54 {dimension_numbers = #tpu.dot_dimension_numbers<[1], [0], [0], [1], [0, 0, 1, 1], [], []>} : vector<8x128xbf16>, vector<128x128xbf16>, vector<8x128xf32> -> vector<8x128xf32>
    %c1_55 = arith.constant 1 : index
    %c0_56 = arith.constant 0 : index
    %c0_57 = arith.constant 0 : index
    %66 = vector.load %arg5[%c1_55, %c0_56, %c0_57] : memref<3x128x128xbf16, #tpu.memory_space<vmem>>, vector<1x128x128xbf16>
    %67 = vector.shape_cast %66 : vector<1x128x128xbf16> to vector<128x128xbf16>
    %cst_58 = arith.constant dense<0.000000e+00> : vector<8x128xf32>
    %68 = tpu.matmul %56, %67, %cst_58 {dimension_numbers = #tpu.dot_dimension_numbers<[1], [0], [0], [1], [0, 0, 1, 1], [], []>} : vector<8x128xbf16>, vector<128x128xbf16>, vector<8x128xf32> -> vector<8x128xf32>
    %69 = arith.addf %65, %68 : vector<8x128xf32>
    %c2_59 = arith.constant 2 : index
    %c0_60 = arith.constant 0 : index
    %c0_61 = arith.constant 0 : index
    %70 = vector.load %arg5[%c2_59, %c0_60, %c0_61] : memref<3x128x128xbf16, #tpu.memory_space<vmem>>, vector<1x128x128xbf16>
    %71 = vector.shape_cast %70 : vector<1x128x128xbf16> to vector<128x128xbf16>
    %cst_62 = arith.constant dense<0.000000e+00> : vector<8x128xf32>
    %72 = tpu.matmul %62, %71, %cst_62 {dimension_numbers = #tpu.dot_dimension_numbers<[1], [0], [0], [1], [0, 0, 1, 1], [], []>} : vector<8x128xbf16>, vector<128x128xbf16>, vector<8x128xf32> -> vector<8x128xf32>
    %73 = arith.addf %69, %72 : vector<8x128xf32>
    %c3_63 = arith.constant 3 : index
    %c0_64 = arith.constant 0 : index
    %c0_65 = arith.constant 0 : index
    %74 = vector.load %arg11[%c3_63, %c0_64, %c0_65] : memref<6x1x128xf32, #tpu.memory_space<vmem>>, vector<1x1x128xf32>
    %75 = vector.shape_cast %74 : vector<1x1x128xf32> to vector<1x128xf32>
    %76 = vector.broadcast %75 : vector<1x128xf32> to vector<8x128xf32>
    %77 = arith.addf %73, %76 : vector<8x128xf32>
    %cst_66 = arith.constant 0.000000e+00 : f32
    %78 = vector.broadcast %cst_66 : f32 to vector<8x128xf32>
    %79 = arith.maximumf %77, %78 : vector<8x128xf32>
    %80 = arith.truncf %79 : vector<8x128xf32> to vector<8x128xbf16>
    %c1_i32_67 = arith.constant 1 : i32
    %81 = tpu.dynamic_rotate %79 by %c1_i32_67 dim 0 : vector<8x128xf32>, i32 -> vector<8x128xf32>
    %82 = arith.mulf %81, %28 : vector<8x128xf32>
    %83 = arith.truncf %82 : vector<8x128xf32> to vector<8x128xbf16>
    %c7_i32_68 = arith.constant 7 : i32
    %84 = tpu.dynamic_rotate %79 by %c7_i32_68 dim 0 : vector<8x128xf32>, i32 -> vector<8x128xf32>
    %85 = arith.mulf %84, %30 : vector<8x128xf32>
    %86 = arith.truncf %85 : vector<8x128xf32> to vector<8x128xbf16>
    %c0_69 = arith.constant 0 : index
    %c0_70 = arith.constant 0 : index
    %c0_71 = arith.constant 0 : index
    %87 = vector.load %arg6[%c0_69, %c0_70, %c0_71] : memref<3x128x128xbf16, #tpu.memory_space<vmem>>, vector<1x128x128xbf16>
    %88 = vector.shape_cast %87 : vector<1x128x128xbf16> to vector<128x128xbf16>
    %cst_72 = arith.constant dense<0.000000e+00> : vector<8x128xf32>
    %89 = tpu.matmul %83, %88, %cst_72 {dimension_numbers = #tpu.dot_dimension_numbers<[1], [0], [0], [1], [0, 0, 1, 1], [], []>} : vector<8x128xbf16>, vector<128x128xbf16>, vector<8x128xf32> -> vector<8x128xf32>
    %c1_73 = arith.constant 1 : index
    %c0_74 = arith.constant 0 : index
    %c0_75 = arith.constant 0 : index
    %90 = vector.load %arg6[%c1_73, %c0_74, %c0_75] : memref<3x128x128xbf16, #tpu.memory_space<vmem>>, vector<1x128x128xbf16>
    %91 = vector.shape_cast %90 : vector<1x128x128xbf16> to vector<128x128xbf16>
    %cst_76 = arith.constant dense<0.000000e+00> : vector<8x128xf32>
    %92 = tpu.matmul %80, %91, %cst_76 {dimension_numbers = #tpu.dot_dimension_numbers<[1], [0], [0], [1], [0, 0, 1, 1], [], []>} : vector<8x128xbf16>, vector<128x128xbf16>, vector<8x128xf32> -> vector<8x128xf32>
    %93 = arith.addf %89, %92 : vector<8x128xf32>
    %c2_77 = arith.constant 2 : index
    %c0_78 = arith.constant 0 : index
    %c0_79 = arith.constant 0 : index
    %94 = vector.load %arg6[%c2_77, %c0_78, %c0_79] : memref<3x128x128xbf16, #tpu.memory_space<vmem>>, vector<1x128x128xbf16>
    %95 = vector.shape_cast %94 : vector<1x128x128xbf16> to vector<128x128xbf16>
    %cst_80 = arith.constant dense<0.000000e+00> : vector<8x128xf32>
    %96 = tpu.matmul %86, %95, %cst_80 {dimension_numbers = #tpu.dot_dimension_numbers<[1], [0], [0], [1], [0, 0, 1, 1], [], []>} : vector<8x128xbf16>, vector<128x128xbf16>, vector<8x128xf32> -> vector<8x128xf32>
    %97 = arith.addf %93, %96 : vector<8x128xf32>
    %c4 = arith.constant 4 : index
    %c0_81 = arith.constant 0 : index
    %c0_82 = arith.constant 0 : index
    %98 = vector.load %arg11[%c4, %c0_81, %c0_82] : memref<6x1x128xf32, #tpu.memory_space<vmem>>, vector<1x1x128xf32>
    %99 = vector.shape_cast %98 : vector<1x1x128xf32> to vector<1x128xf32>
    %100 = vector.broadcast %99 : vector<1x128xf32> to vector<8x128xf32>
    %101 = arith.addf %97, %100 : vector<8x128xf32>
    %102 = arith.addf %101, %55 : vector<8x128xf32>
    %cst_83 = arith.constant 0.000000e+00 : f32
    %103 = vector.broadcast %cst_83 : f32 to vector<8x128xf32>
    %104 = arith.maximumf %102, %103 : vector<8x128xf32>
    %105 = arith.truncf %104 : vector<8x128xf32> to vector<8x128xbf16>
    %c0_84 = arith.constant 0 : index
    %c0_85 = arith.constant 0 : index
    %106 = vector.load %arg8[%c0_84, %c0_85] : memref<128x128xbf16, #tpu.memory_space<vmem>>, vector<128x128xbf16>
    %cst_86 = arith.constant dense<0.000000e+00> : vector<8x128xf32>
    %107 = tpu.matmul %105, %106, %cst_86 {dimension_numbers = #tpu.dot_dimension_numbers<[1], [0], [0], [1], [0, 0, 1, 1], [], []>} : vector<8x128xbf16>, vector<128x128xbf16>, vector<8x128xf32> -> vector<8x128xf32>
    %108 = arith.truncf %55 : vector<8x128xf32> to vector<8x128xbf16>
    %c0_87 = arith.constant 0 : index
    %c0_88 = arith.constant 0 : index
    %109 = vector.load %arg9[%c0_87, %c0_88] : memref<128x128xbf16, #tpu.memory_space<vmem>>, vector<128x128xbf16>
    %cst_89 = arith.constant dense<0.000000e+00> : vector<8x128xf32>
    %110 = tpu.matmul %108, %109, %cst_89 {dimension_numbers = #tpu.dot_dimension_numbers<[1], [0], [0], [1], [0, 0, 1, 1], [], []>} : vector<8x128xbf16>, vector<128x128xbf16>, vector<8x128xf32> -> vector<8x128xf32>
    %111 = arith.addf %107, %110 : vector<8x128xf32>
    %c0_90 = arith.constant 0 : index
    %c0_91 = arith.constant 0 : index
    %112 = vector.load %arg10[%c0_90, %c0_91] : memref<64x128xbf16, #tpu.memory_space<vmem>>, vector<64x128xbf16>
    %cst_92 = arith.constant dense<0.000000e+00> : vector<8x128xf32>
    %113 = tpu.matmul %10, %112, %cst_92 {dimension_numbers = #tpu.dot_dimension_numbers<[1], [0], [0], [1], [0, 0, 1, 1], [], []>} : vector<8x64xbf16>, vector<64x128xbf16>, vector<8x128xf32> -> vector<8x128xf32>
    %114 = arith.addf %111, %113 : vector<8x128xf32>
    %c5 = arith.constant 5 : index
    %c0_93 = arith.constant 0 : index
    %c0_94 = arith.constant 0 : index
    %115 = vector.load %arg11[%c5, %c0_93, %c0_94] : memref<6x1x128xf32, #tpu.memory_space<vmem>>, vector<1x1x128xf32>
    %116 = vector.shape_cast %115 : vector<1x1x128xf32> to vector<1x128xf32>
    %117 = vector.broadcast %116 : vector<1x128xf32> to vector<8x128xf32>
    %118 = arith.addf %114, %117 : vector<8x128xf32>
    %cst_95 = arith.constant 0.000000e+00 : f32
    %119 = vector.broadcast %cst_95 : f32 to vector<8x128xf32>
    %120 = arith.maximumf %118, %119 : vector<8x128xf32>
    %c0_96 = arith.constant 0 : index
    %c0_97 = arith.constant 0 : index
    %c0_98 = arith.constant 0 : index
    %121 = vector.load %arg13[%c0_96, %c0_97, %c0_98] : memref<1x8x128xf32, #tpu.memory_space<vmem>>, vector<1x8x128xf32>
    %122 = vector.shape_cast %121 : vector<1x8x128xf32> to vector<8x128xf32>
    %123 = vector.shape_cast %120 : vector<8x128xf32> to vector<1x8x128xf32>
    tpu.vector_store %arg13[%c0_96, %c0_97, %c0_98], %123 {strides = array<i32>} : memref<1x8x128xf32, #tpu.memory_space<vmem>>, vector<1x8x128xf32>,
    return
  }
  func.func @transform_0(%arg0: i32) -> (i32, i32, i32, i32) {
    %c0_i32 = arith.constant 0 : i32
    %c0_i32_0 = arith.constant 0 : i32
    %c0_i32_1 = arith.constant 0 : i32
    %c0_i32_2 = arith.constant 0 : i32
    return %arg0, %c0_i32, %c0_i32_0, %c0_i32_1 : i32, i32, i32, i32
  }
  func.func @transform_1(%arg0: i32) -> (i32, i32, i32) {
    %c0_i32 = arith.constant 0 : i32
    %c0_i32_0 = arith.constant 0 : i32
    %c0_i32_1 = arith.constant 0 : i32
    return %arg0, %c0_i32, %c0_i32_0 : i32, i32, i32
  }
  func.func @transform_2(%arg0: i32) -> (i32, i32) {
    %c0_i32 = arith.constant 0 : i32
    %c0_i32_0 = arith.constant 0 : i32
    %c0_i32_1 = arith.constant 0 : i32
    return %c0_i32, %c0_i32_0 : i32, i32
  }
  func.func @transform_3(%arg0: i32) -> (i32, i32, i32) {
    %c0_i32 = arith.constant 0 : i32
    %c0_i32_0 = arith.constant 0 : i32
    %c0_i32_1 = arith.constant 0 : i32
    %c0_i32_2 = arith.constant 0 : i32
    return %c0_i32, %c0_i32_0, %c0_i32_1 : i32, i32, i32
  }
  func.func @transform_4(%arg0: i32) -> (i32, i32, i32) {
    %c0_i32 = arith.constant 0 : i32
    %c0_i32_0 = arith.constant 0 : i32
    %c0_i32_1 = arith.constant 0 : i32
    %c0_i32_2 = arith.constant 0 : i32
    return %c0_i32, %c0_i32_0, %c0_i32_1 : i32, i32, i32
  }
  func.func @transform_5(%arg0: i32) -> (i32, i32, i32) {
    %c0_i32 = arith.constant 0 : i32
    %c0_i32_0 = arith.constant 0 : i32
    %c0_i32_1 = arith.constant 0 : i32
    %c0_i32_2 = arith.constant 0 : i32
    return %c0_i32, %c0_i32_0, %c0_i32_1 : i32, i32, i32
  }
  func.func @transform_6(%arg0: i32) -> (i32, i32) {
    %c0_i32 = arith.constant 0 : i32
    %c0_i32_0 = arith.constant 0 : i32
    %c0_i32_1 = arith.constant 0 : i32
    return %c0_i32, %c0_i32_0 : i32, i32
  }
  func.func @transform_7(%arg0: i32) -> (i32, i32) {
    %c0_i32 = arith.constant 0 : i32
    %c0_i32_0 = arith.constant 0 : i32
    %c0_i32_1 = arith.constant 0 : i32
    return %c0_i32, %c0_i32_0 : i32, i32
  }
  func.func @transform_8(%arg0: i32) -> (i32, i32) {
    %c0_i32 = arith.constant 0 : i32
    %c0_i32_0 = arith.constant 0 : i32
    %c0_i32_1 = arith.constant 0 : i32
    return %c0_i32, %c0_i32_0 : i32, i32
  }
  func.func @transform_9(%arg0: i32) -> (i32, i32) {
    %c0_i32 = arith.constant 0 : i32
    %c0_i32_0 = arith.constant 0 : i32
    %c0_i32_1 = arith.constant 0 : i32
    return %c0_i32, %c0_i32_0 : i32, i32
  }
  func.func @transform_10(%arg0: i32) -> (i32, i32, i32) {
    %c0_i32 = arith.constant 0 : i32
    %c0_i32_0 = arith.constant 0 : i32
    %c0_i32_1 = arith.constant 0 : i32
    %c0_i32_2 = arith.constant 0 : i32
    return %c0_i32, %c0_i32_0, %c0_i32_1 : i32, i32, i32
  }
  func.func @transform_11(%arg0: i32) -> (i32, i32, i32) {
    %c0_i32 = arith.constant 0 : i32
    %c0_i32_0 = arith.constant 0 : i32
    %c0_i32_1 = arith.constant 0 : i32
    %c0_i32_2 = arith.constant 0 : i32
    return %c0_i32, %c0_i32_0, %c0_i32_1 : i32, i32, i32
  }
  func.func @transform_12(%arg0: i32) -> (i32, i32, i32) {
    %c0_i32 = arith.constant 0 : i32
    %c0_i32_0 = arith.constant 0 : i32
    %c0_i32_1 = arith.constant 0 : i32
    return %arg0, %c0_i32, %c0_i32_0 : i32, i32, i32
  }
}

</mosaic_0001>

<bundles_post_ra>
// kernel: _tree_forward.1
= control target key start
LH: loop header
LB: loop body
LE: loop exit
PB: predicated region body
PF: predicated region fallthrough
CT: control target
= control target key end

     0   :  { %v2492_v0 = vmov 0.0   ;;  %vm2493_vm0 = vmmov 0   ;;  %vm91_vm1 = vcmask 523264   ;;  %s3126_s6 = inlined_call_operand.vmem [shape: bf16[64,128], index: 6, kind: input, shape index: {}]   ;;  %s3127_s2 = inlined_call_operand.vmem [shape: bf16[384,128], index: 2, kind: input, shape index: {}]   ;;  %s3128_s0 = inlined_call_operand.vmem [shape: bf16[1,4,8,64], index: 0, kind: input, shape index: {}]   ;;  %s3129_s1 = inlined_call_operand.vmem [shape: bf16[1,8,384], index: 1, kind: input, shape index: {}]   ;;  %s3130_s3 = inlined_call_operand.vmem [shape: bf16[3,128,128], index: 3, kind: input, shape index: {}]   ;;  %s3131_s10 = inlined_call_operand.vmem [shape: f32[6,1,128], index: 10, kind: input, shape index: {}]   ;;  %s3132_s11 = inlined_call_operand.vmem [shape: f32[2,8,128], index: 11, kind: input, shape index: {}]   ;;  %s3133_s4 = inlined_call_operand.vmem [shape: bf16[3,128,128], index: 4, kind: input, shape index: {}]   ;;  %s3134_s5 = inlined_call_operand.vmem [shape: bf16[3,128,128], index: 5, kind: input, shape index: {}]   ;;  %s3135_s8 = inlined_call_operand.vmem [shape: bf16[128,128], index: 8, kind: input, shape index: {}]   ;;  %s3136_s7 = inlined_call_operand.vmem [shape: bf16[128,128], index: 7, kind: input, shape index: {}]   ;;  %s3137_s9 = inlined_call_operand.vmem [shape: bf16[64,128], index: 9, kind: input, shape index: {}]   ;;  %s3138_s12 = inlined_call_operand.vmem [shape: f32[1,8,128], index: 12, kind: output, shape index: {}]  }
   0x1   :  { %2103 = vmatprep.subr.bf16.mxu0 %v2492_v0  ;;  %v2369_v1 = vld [vmem:[%s3126_s6 + $0x18] sm:$0xff]   ;;  %2111 = vmatprep.mubr.msk.bf16.mxu0 %vm2493_vm0, %v2492_v0  ;;  %v2371_v3 = vld [vmem:[%s3126_s6 + $0x10] sm:$0xff]   ;;  %v2374_v6 = vld [vmem:[%s3126_s6 + $0x8] sm:$0xff]  }
   0x2   :  { %v2370_v2 = vld [vmem:[%s3127_s2 + $0x78] sm:$0xff]   ;;  %2104 = vmatpush3.bf16.msra.mxu0 %v2369_v1  ;;  %v2373_v5 = vld [vmem:[%s3127_s2 + $0x70] sm:$0xff]   ;;  %v2376_v8 = vld [vmem:[%s3127_s2 + $0x68] sm:$0xff]  }
   0x3   :  { %2105 = vmatprep.subr.bf16.mxu0 %v2492_v0  ;;  %1968 = vmatprep.subr.bf16.mxu1 %v2370_v2  ;;  %v2372_v4 = vld [vmem:[%s3127_s2 + $0x38] sm:$0xff]   ;;  %v2375_v7 = vld [vmem:[%s3127_s2 + $0x30] sm:$0xff]   ;;  %v2377_v9 = vld [vmem:[%s3126_s6] sm:$0xff]  }
   0x4   :  { %1969 = vmatpush3.bf16.msra.mxu1 %v2372_v4  ;;  %v2378_v10 = vld [vmem:[%s3127_s2 + $0x28] sm:$0xff]   ;;  %v42_v11 = vld [vmem:[%s3128_s0] sm:$0xf]  ;;  %v1727_v12 = vld [vmem:[%s3128_s0 + $0x4] sm:$0xf] }
   0x5   :  { %1970 = vmatprep.subr.bf16.mxu1 %v2373_v5  ;;  %v1728_v13 = vld [vmem:[%s3128_s0 + $0x8] sm:$0xf]  ;;  %v45_v14 = vmax.bf16 %v1727_v12, %v42_v11  ;;  %v1729_v15 = vld [vmem:[%s3128_s0 + $0xc] sm:$0xf]  ;;  %v2379_v17 = vld [vmem:[%s3127_s2 + $0x60] sm:$0xff]  }
   0x6   :  { %2106 = vmatpush3.bf16.msra.mxu0 %v2371_v3  ;;  %v50_v16 = vmax.bf16 %v1729_v15, %v1728_v13  ;;  %v2380_v18 = vld [vmem:[%s3127_s2 + $0x20] sm:$0xff]   ;;  %v2381_v20 = vld [vmem:[%s3127_s2 + $0xb8] sm:$0xff]   ;;  %v2384_v23 = vld [vmem:[%s3127_s2 + $0xb0] sm:$0xff]  }
   0x7   :  { %2107 = vmatprep.subr.bf16.mxu0 %v2492_v0  ;;  %v2382_v21 = vld [vmem:[%s3127_s2 + $0x58] sm:$0xff]   ;;  %v2385_v24 = vld [vmem:[%s3127_s2 + $0x50] sm:$0xff]   ;;  %v2387_v26 = vld [vmem:[%s3127_s2 + $0xa8] sm:$0xff]  }
   0x8   :  { %1971 = vmatpush3.bf16.msra.mxu1 %v2375_v7  ;;  %v2613_v19 = vmax.bf16 %v50_v16, %v45_v14  ;;  %v2383_v22 = vld [vmem:[%s3127_s2 + $0x18] sm:$0xff]   ;;  %v2386_v25 = vld [vmem:[%s3127_s2 + $0x10] sm:$0xff]   ;;  %v2388_v27 = vld [vmem:[%s3127_s2 + $0x48] sm:$0xff]  }
   0x9   :  { %1972 = vmatprep.subr.bf16.mxu1 %v2376_v8  ;;  %v2389_v28 = vld [vmem:[%s3127_s2 + $0x8] sm:$0xff]   ;;  %v2390_v29 = vld [vmem:[%s3127_s2 + $0xa0] sm:$0xff]   ;;  %v2393_v34 = vld [vmem:[%s3127_s2 + $0x98] sm:$0xff]  }
   0xa   :  { %2108 = vmatpush3.bf16.msra.mxu0 %v2374_v6  ;;  %v2391_v30 = vld [vmem:[%s3127_s2 + $0x40] sm:$0xff]   ;;  %v2397_v36 = vld [vmem:[%s3127_s2 + $0x90] sm:$0xff]   ;;  %v2398_v37 = vld [vmem:[%s3127_s2 + $0x88] sm:$0xff]  }
   0xb   :  { %2109 = vmatprep.subr.bf16.mxu0 %v2492_v0  ;;  %v135_v31 = vld [vmem:[%s3129_s1] sm:$0xff]  ;;  %v2396_v39 = vld [vmem:[%s3129_s1 + $0x8] ss:$0 sps:$4 sm:$0xff]   ;;  %v2400_v40 = vld [vmem:[%s3130_s3 + $0x78] sm:$0xff]  }
   0xc   :  { %1973 = vmatpush3.bf16.msra.mxu1 %v2378_v10  ;;  %v1739_v32 = vcombine.high %v135_v31, %v135_v31  ;;  %v2392_v33 = vld [vmem:[%s3127_s2] sm:$0xff]   ;;  %v1738_v35 = vcombine.low %v135_v31, %v135_v31  ;;  %v2401_v41 = vld [vmem:[%s3130_s3 + $0x70] sm:$0xff]   ;;  %v2402_v42 = vld [vmem:[%s3130_s3 + $0x38] sm:$0xff]  }
   0xd   :  { %1974 = vmatprep.subr.bf16.mxu1 %v2379_v17  ;;  %v2399_v38 = vld [vmem:[%s3127_s2 + $0x80] sm:$0xff]   ;;  %v2404_v43 = vld [vmem:[%s3130_s3 + $0x30] sm:$0xff]   ;;  %v2403_v44 = vld [vmem:[%s3130_s3 + $0x68] sm:$0xff]  }
   0xe   :  { %2110 = vmatpush3.bf16.msra.mxu0 %v2377_v9  ;;  %380 = vmatprep.mubr.bf16.mxu1 %v1739_v32  ;;  %v2405_v45 = vld [vmem:[%s3130_s3 + $0x60] sm:$0xff]   ;;  %v2406_v46 = vld [vmem:[%s3130_s3 + $0x28] sm:$0xff]   ;;  %v2407_v47 = vld [vmem:[%s3130_s3 + $0x58] sm:$0xff]  }
   0xf   :  { %2115 = vmatprep.subr.bf16.mxu0 %v2492_v0  ;;  %v2408_v48 = vld [vmem:[%s3130_s3 + $0x20] sm:$0xff]   ;;  %v2409_v49 = vld [vmem:[%s3130_s3 + $0x50] sm:$0xff]   ;;  %v2410_v50 = vld [vmem:[%s3130_s3 + $0x18] sm:$0xff]  }
  0x10   :  { %1975 = vmatpush3.bf16.msra.mxu1 %v2380_v18  ;;  %v2411_v51 = vld [vmem:[%s3130_s3 + $0x48] sm:$0xff]   ;;  %v2412_v52 = vld [vmem:[%s3130_s3 + $0x10] sm:$0xff]   ;;  %v2413_v53 = vld [vmem:[%s3130_s3 + $0x40] sm:$0xff]  }
  0x11   :  { %2112 = vmatmul.mubr.msk.bf16.vlgmr.msra.gmra.mxu0 %vm91_vm1, %v2613_v19  ;;  %1976 = vmatprep.subr.bf16.mxu1 %v2382_v21  ;;  %v2414_v54 = vld [vmem:[%s3130_s3 + $0x8] sm:$0xff]   ;;  %v2416_v55 = vld [vmem:[%s3130_s3] sm:$0xff]   ;;  %v2415_v10 = vld [vmem:[%s3130_s3 + $0xb8] sm:$0xff]  }
  0x12   :  { %2116 = vmatpush3.bf16.msra.mxu0 %v2381_v20  ;;  %2131 = vmatprep.mubr.msk.bf16.mxu0 %vm2493_vm0, %v2492_v0  ;;  %v1737_v2 = vld [vmem:[%s3131_s10 + $0x1] ss:$0 sm:$0xff]  ;;  %v2417_v15 = vld [vmem:[%s3130_s3 + $0xb0] sm:$0xff]   ;;  %v2418_v17 = vld [vmem:[%s3130_s3 + $0xa8] sm:$0xff]  }
  0x13   :  { %2117 = vmatprep.subr.bf16.mxu0 %v2492_v0  ;;  %v2759_v8 = vld [vmem:[%s3132_s11] sm:$0xff]  ;;  %v2420_v20 = vld [vmem:[%s3130_s3 + $0x98] sm:$0xff]   ;;  %v2421_v21 = vld [vmem:[%s3130_s3 + $0x90] sm:$0xff]  }
  0x14   :  { %1977 = vmatpush3.bf16.msra.mxu1 %v2383_v22  ;;  %v2419_v18 = vld [vmem:[%s3130_s3 + $0xa0] sm:$0xff]   ;;  %v2422_v22 = vld [vmem:[%s3130_s3 + $0x88] sm:$0xff]   ;;  %v2428_v31 = vld [vmem:[%s3133_s4 + $0x30] sm:$0xff]  }
  0x15   :  { %1978 = vmatprep.subr.bf16.mxu1 %v2385_v24  ;;  %v2796_v24 = vld [vmem:[%s3132_s11 + $0x8] sm:$0xff] }
  0x16   :  { %2118 = vmatpush3.bf16.msra.mxu0 %v2384_v23  ;;  %v2427_v32 = vld [vmem:[%s3133_s4 + $0x68] sm:$0xff]  }
  0x17   :  { %2119 = vmatprep.subr.bf16.mxu0 %v2492_v0 }
  0x18   :  { %1979 = vmatpush3.bf16.msra.mxu1 %v2386_v25  ;;  %v2423_v25 = vld [vmem:[%s3130_s3 + $0x80] sm:$0xff]  }
  0x19   :  { %1980 = vmatprep.subr.bf16.mxu1 %v2388_v27 }
  0x1a   :  { %2120 = vmatpush3.bf16.msra.mxu0 %v2387_v26 }
  0x1b   :  { %2121 = vmatprep.subr.bf16.mxu0 %v2492_v0 }
  0x1c   :  { %1981 = vmatpush3.bf16.msra.mxu1 %v2389_v28  ;;  %v2424_v28 = vld [vmem:[%s3133_s4 + $0x78] sm:$0xff]  }
  0x1d   :  { %1982 = vmatprep.subr.bf16.mxu1 %v2391_v30  ;;  %v2426_v30 = vld [vmem:[%s3133_s4 + $0x38] sm:$0xff]  }
  0x1e   :  { %2122 = vmatpush3.bf16.msra.mxu0 %v2390_v29  ;;  %v2425_v29 = vld [vmem:[%s3133_s4 + $0x70] sm:$0xff]  }
  0x1f   :  { %2123 = vmatprep.subr.bf16.mxu0 %v2492_v0 }
  0x20   :  { %1983 = vmatpush3.bf16.msra.mxu1 %v2392_v33  ;;  %v2430_v33 = vld [vmem:[%s3133_s4 + $0x28] sm:$0xff]  }
  0x21   :  { %2135 = vmatprep.subr.bf16.mxu1 %v2492_v0 }
  0x22   :  { %2124 = vmatpush3.bf16.msra.mxu0 %v2393_v34  ;;  %v2429_v34 = vld [vmem:[%s3133_s4 + $0x60] sm:$0xff]  }
  0x23   :  { %2125 = vmatprep.subr.bf16.mxu0 %v2492_v0  ;;  %381 = vmatmul.mubr.bf16.vlgmr.msra.gmra.mxu1 %v1738_v35  ;;  %v2432_v35 = vld [vmem:[%s3133_s4 + $0x20] sm:$0xff]  }
  0x24   :  { %2151 = vmatprep.mubr.msk.bf16.mxu1 %vm2493_vm0, %v2492_v0  ;;  %2136 = vmatpush3.bf16.msra.mxu1 %v2400_v40  ;;  %v2436_v40 = vld [vmem:[%s3133_s4 + $0x10] sm:$0xff]  }
  0x25   :  { %2137 = vmatprep.subr.bf16.mxu1 %v2492_v0 }
  0x26   :  { %2126 = vmatpush3.bf16.msra.mxu0 %v2397_v36  ;;  %v2431_v36 = vld [vmem:[%s3133_s4 + $0x58] sm:$0xff]  }
  0x27   :  { %2127 = vmatprep.subr.bf16.mxu0 %v2492_v0 }
  0x28   :  { %2138 = vmatpush3.bf16.msra.mxu1 %v2401_v41  ;;  %v2437_v41 = vld [vmem:[%s3133_s4 + $0x40] sm:$0xff]  }
  0x29   :  { %2139 = vmatprep.subr.bf16.mxu1 %v2492_v0 }
  0x2a   :  { %2128 = vmatpush3.bf16.msra.mxu0 %v2398_v37  ;;  %v2433_v37 = vld [vmem:[%s3133_s4 + $0x50] sm:$0xff]  }
  0x2b   :  { %2129 = vmatprep.subr.bf16.mxu0 %v2492_v0 }
  0x2c   :  { %2140 = vmatpush3.bf16.msra.mxu1 %v2403_v44 }
  0x2d   :  { %2141 = vmatprep.subr.bf16.mxu1 %v2492_v0 }
  0x2e   :  { %2130 = vmatpush3.bf16.msra.mxu0 %v2399_v38  ;;  %v2434_v38 = vld [vmem:[%s3133_s4 + $0x18] sm:$0xff]  }
  0x2f   :  { %2155 = vmatprep.subr.bf16.mxu0 %v2492_v0 }
  0x30   :  { %2142 = vmatpush3.bf16.msra.mxu1 %v2405_v45 }
  0x31   :  { %2132 = vmatmul.mubr.bf16.vlgmr.msra.gmra.mxu0 %v2396_v39  ;;  %2143 = vmatprep.subr.bf16.mxu1 %v2492_v0  ;;  %v2435_v39 = vld [vmem:[%s3133_s4 + $0x48] sm:$0xff]  }
  0x32   :  { %2171 = vmatprep.mubr.msk.bf16.mxu0 %vm2493_vm0, %v2492_v0  ;;  %2156 = vmatpush3.bf16.msra.mxu0 %v2402_v42  ;;  %v2438_v42 = vld [vmem:[%s3133_s4 + $0x8] sm:$0xff]  }
  0x33   :  { %2157 = vmatprep.subr.bf16.mxu0 %v2492_v0 }
  0x34   :  { %2144 = vmatpush3.bf16.msra.mxu1 %v2407_v47 }
  0x35   :  { %2145 = vmatprep.subr.bf16.mxu1 %v2492_v0 }
  0x36   :  { %2158 = vmatpush3.bf16.msra.mxu0 %v2404_v43  ;;  %v2440_v43 = vld [vmem:[%s3133_s4] sm:$0xff]  }
  0x37   :  { %2159 = vmatprep.subr.bf16.mxu0 %v2492_v0 }
  0x38   :  { %2146 = vmatpush3.bf16.msra.mxu1 %v2409_v49 }
  0x39   :  { %2147 = vmatprep.subr.bf16.mxu1 %v2492_v0 }
  0x3a   :  { %2160 = vmatpush3.bf16.msra.mxu0 %v2406_v46 }
  0x3b   :  { %2161 = vmatprep.subr.bf16.mxu0 %v2492_v0 }
  0x3c   :  { %2148 = vmatpush3.bf16.msra.mxu1 %v2411_v51 }
  0x3d   :  { %2149 = vmatprep.subr.bf16.mxu1 %v2492_v0 }
  0x3e   :  { %2162 = vmatpush3.bf16.msra.mxu0 %v2408_v48 }
  0x3f   :  { %2163 = vmatprep.subr.bf16.mxu0 %v2492_v0 }
  0x40   :  { %2150 = vmatpush3.bf16.msra.mxu1 %v2413_v53  ;;  %v1730_v53 = vld [vmem:[%s3131_s10] ss:$0 sm:$0xff] }
  0x41   :  { %2175 = vmatprep.subr.bf16.mxu1 %v2492_v0 }
  0x42   :  { %2164 = vmatpush3.bf16.msra.mxu0 %v2410_v50 }
  0x43   :  { %2165 = vmatprep.subr.bf16.mxu0 %v2492_v0 }
  0x46   :  { %2166 = vmatpush3.bf16.msra.mxu0 %v2412_v52 }
  0x47   :  { %2167 = vmatprep.subr.bf16.mxu0 %v2492_v0 }
  0x4a   :  { %2168 = vmatpush3.bf16.msra.mxu0 %v2414_v54 }
  0x4b   :  { %2169 = vmatprep.subr.bf16.mxu0 %v2492_v0 }
  0x4e   :  { %2170 = vmatpush3.bf16.msra.mxu0 %v2416_v55  ;;  %v1823_v55 = vld [vmem:[%s3131_s10 + $0x2] ss:$0 sm:$0xff] }
  0x4f   :  { %2195 = vmatprep.subr.bf16.mxu0 %v2492_v0 }
  0xd1   :  { %v2751_v56 = vpop.f32.mrf.mxu0 }
  0xd3   :  { %v2113_v57 = vpop.f32.mrf.mxu0 }
  0xd5   :  { %v132_v58 = vpop.f32.mrf.mxu0 }
  0xd7   :  { %v2114_v59 = vpop.f32.mrf.mxu0 }
  0xd8   :  { %v130_v59 = vadd.f32 %v1730_v53, %v2751_v56 }
  0xe3   :  { %v1984_v60 = vpop.f32.mrf.mxu1 }
  0xe5   :  { %v1985_v61 = vpop.f32.mrf.mxu1 }
  0xe6   :  { %v1986_v1 = vadd.f32 %v1985_v61, %v1984_v60 }
  0xe7   :  { %v1987_v62 = vpop.f32.mrf.mxu1 }
  0xe8   :  { %v383_v3 = vadd.f32 %v1986_v1, %v1737_v2  ;;  %v2439_v2 = vld [vmem:[%s3133_s4 + $0xb8] sm:$0xff]  }
  0xe9   :  { %v1988_v63 = vpop.f32.mrf.mxu1 }
  0xf1   :  { %v422_v4 = vpop.f32.mrf.mxu0 }
  0xf2   :  { %v423_v5 = vadd.f32 %v422_v4, %v383_v3 }
  0xf3   :  { %v2133_v6 = vpop.f32.mrf.mxu0 }
  0xf4   :  { %v428_v7 = vmax.f32 %v423_v5, 0.0  ;;  %v2441_v5 = vld [vmem:[%s3133_s4 + $0xb0] sm:$0xff]  }
  0xf5   :  { %v425_v9 = vpop.f32.mrf.mxu0 }
  0xf6   :  { %v432_v11 = vpack.c.bf16 %v428_v7, %v428_v7  ;;  %v433_v12 = vrot.slane %v428_v7, 7  ;;  %v436_v23 = vrot.slane %v428_v7, 1  ;;  %v2442_v7 = vld [vmem:[%s3133_s4 + $0xa8] sm:$0xff]   ;;  %v2443_v9 = vld [vmem:[%s3133_s4 + $0xa0] sm:$0xff]  }
  0xf7   :  { %v2134_v13 = vpop.f32.mrf.mxu0 }
  0xf8   :  { %v434_v14 = vmul.f32 %v433_v12, %v2759_v8  ;;  %2152 = vmatmul.mubr.bf16.vlgmr.msra.gmra.mxu1 %v432_v11  ;;  %v437_v26 = vmul.f32 %v2796_v24, %v436_v23  ;;  %v2445_v11 = vld [vmem:[%s3133_s4 + $0x90] sm:$0xff]   ;;  %v2446_v12 = vld [vmem:[%s3133_s4 + $0x88] sm:$0xff]  }
  0xf9   :  { %2176 = vmatpush3.bf16.msra.mxu1 %v2415_v10  ;;  %2191 = vmatprep.mubr.msk.bf16.mxu1 %vm2493_vm0, %v2492_v0  ;;  %v2444_v10 = vld [vmem:[%s3133_s4 + $0x98] sm:$0xff]   ;;  %v2454_v23 = vld [vmem:[%s3134_s5 + $0x28] sm:$0xff]  }
  0xfa   :  { %2177 = vmatprep.subr.bf16.mxu1 %v2492_v0  ;;  %v435_v16 = vpack.c.bf16 %v434_v14, %v434_v14  ;;  %v438_v27 = vpack.c.bf16 %v437_v26, %v437_v26  ;;  %v2447_v14 = vld [vmem:[%s3133_s4 + $0x80] sm:$0xff]  }
  0xfb   :  { %v2456_v26 = vld [vmem:[%s3134_s5 + $0x20] sm:$0xff]  }
  0xfc   :  { %2172 = vmatmul.mubr.bf16.vlgmr.msra.gmra.mxu0 %v435_v16 }
  0xfd   :  { %2178 = vmatpush3.bf16.msra.mxu1 %v2417_v15  ;;  %2211 = vmatprep.mubr.msk.bf16.mxu0 %vm2493_vm0, %v2492_v0 }
  0xfe   :  { %2179 = vmatprep.subr.bf16.mxu1 %v2492_v0  ;;  %2196 = vmatpush3.bf16.msra.mxu0 %v2424_v28  ;;  %v2458_v28 = vld [vmem:[%s3134_s5 + $0x18] sm:$0xff]  }
  0xff   :  { %2197 = vmatprep.subr.bf16.mxu0 %v2492_v0 }
 0x101   :  { %2180 = vmatpush3.bf16.msra.mxu1 %v2418_v17  ;;  %v2448_v17 = vld [vmem:[%s3134_s5 + $0x78] sm:$0xff]  }
 0x102   :  { %2181 = vmatprep.subr.bf16.mxu1 %v2492_v0  ;;  %2198 = vmatpush3.bf16.msra.mxu0 %v2425_v29  ;;  %v2457_v29 = vld [vmem:[%s3134_s5 + $0x50] sm:$0xff]  }
 0x103   :  { %2199 = vmatprep.subr.bf16.mxu0 %v2492_v0 }
 0x105   :  { %2182 = vmatpush3.bf16.msra.mxu1 %v2419_v18  ;;  %v2449_v18 = vld [vmem:[%s3134_s5 + $0x70] sm:$0xff]  }
 0x106   :  { %2183 = vmatprep.subr.bf16.mxu1 %v2492_v0  ;;  %2200 = vmatpush3.bf16.msra.mxu0 %v2427_v32  ;;  %v2461_v32 = vld [vmem:[%s3134_s5 + $0x40] sm:$0xff]  }
 0x107   :  { %2201 = vmatprep.subr.bf16.mxu0 %v2492_v0 }
 0x109   :  { %2184 = vmatpush3.bf16.msra.mxu1 %v2420_v20  ;;  %v2450_v20 = vld [vmem:[%s3134_s5 + $0x38] sm:$0xff]  }
 0x10a   :  { %2185 = vmatprep.subr.bf16.mxu1 %v2492_v0  ;;  %2202 = vmatpush3.bf16.msra.mxu0 %v2429_v34  ;;  %v2463_v34 = vld [vmem:[%s3134_s5] sm:$0xff]  }
 0x10b   :  { %2203 = vmatprep.subr.bf16.mxu0 %v2492_v0 }
 0x10d   :  { %2186 = vmatpush3.bf16.msra.mxu1 %v2421_v21  ;;  %v2452_v21 = vld [vmem:[%s3134_s5 + $0x30] sm:$0xff]  }
 0x10e   :  { %2187 = vmatprep.subr.bf16.mxu1 %v2492_v0  ;;  %2204 = vmatpush3.bf16.msra.mxu0 %v2431_v36 }
 0x10f   :  { %2205 = vmatprep.subr.bf16.mxu0 %v2492_v0 }
 0x111   :  { %2188 = vmatpush3.bf16.msra.mxu1 %v2422_v22  ;;  %v2451_v22 = vld [vmem:[%s3134_s5 + $0x68] sm:$0xff]  }
 0x112   :  { %2189 = vmatprep.subr.bf16.mxu1 %v2492_v0  ;;  %2206 = vmatpush3.bf16.msra.mxu0 %v2433_v37 }
 0x113   :  { %2207 = vmatprep.subr.bf16.mxu0 %v2492_v0 }
 0x115   :  { %2190 = vmatpush3.bf16.msra.mxu1 %v2423_v25  ;;  %v2453_v25 = vld [vmem:[%s3134_s5 + $0x60] sm:$0xff]  }
 0x116   :  { %2215 = vmatprep.subr.bf16.mxu1 %v2492_v0  ;;  %2208 = vmatpush3.bf16.msra.mxu0 %v2435_v39 }
 0x117   :  { %2209 = vmatprep.subr.bf16.mxu0 %v2492_v0 }
 0x118   :  { %2192 = vmatmul.mubr.bf16.vlgmr.msra.gmra.mxu1 %v438_v27  ;;  %v2455_v27 = vld [vmem:[%s3134_s5 + $0x58] sm:$0xff]  }
 0x119   :  { %2231 = vmatprep.mubr.msk.bf16.mxu1 %vm2493_vm0, %v2492_v0  ;;  %2216 = vmatpush3.bf16.msra.mxu1 %v2426_v30  ;;  %v2459_v30 = vld [vmem:[%s3134_s5 + $0x48] sm:$0xff]  }
 0x11a   :  { %2217 = vmatprep.subr.bf16.mxu1 %v2492_v0  ;;  %2210 = vmatpush3.bf16.msra.mxu0 %v2437_v41 }
 0x11b   :  { %2235 = vmatprep.subr.bf16.mxu0 %v2492_v0 }
 0x11d   :  { %2218 = vmatpush3.bf16.msra.mxu1 %v2428_v31  ;;  %v2460_v31 = vld [vmem:[%s3134_s5 + $0x10] sm:$0xff]  }
 0x11e   :  { %2219 = vmatprep.subr.bf16.mxu1 %v2492_v0 }
 0x121   :  { %2220 = vmatpush3.bf16.msra.mxu1 %v2430_v33  ;;  %v2462_v33 = vld [vmem:[%s3134_s5 + $0x8] sm:$0xff]  }
 0x122   :  { %2221 = vmatprep.subr.bf16.mxu1 %v2492_v0 }
 0x125   :  { %2222 = vmatpush3.bf16.msra.mxu1 %v2432_v35 }
 0x126   :  { %2223 = vmatprep.subr.bf16.mxu1 %v2492_v0 }
 0x129   :  { %2224 = vmatpush3.bf16.msra.mxu1 %v2434_v38 }
 0x12a   :  { %2225 = vmatprep.subr.bf16.mxu1 %v2492_v0 }
 0x12d   :  { %2226 = vmatpush3.bf16.msra.mxu1 %v2436_v40 }
 0x12e   :  { %2227 = vmatprep.subr.bf16.mxu1 %v2492_v0 }
 0x131   :  { %2228 = vmatpush3.bf16.msra.mxu1 %v2438_v42 }
 0x132   :  { %2229 = vmatprep.subr.bf16.mxu1 %v2492_v0 }
 0x135   :  { %2230 = vmatpush3.bf16.msra.mxu1 %v2440_v43 }
 0x136   :  { %2255 = vmatprep.subr.bf16.mxu1 %v2492_v0 }
 0x1b8   :  { %v554_v44 = vpop.f32.mrf.mxu1 }
 0x1ba   :  { %v2153_v45 = vpop.f32.mrf.mxu1 }
 0x1bb   :  { %v1881_v45 = vld [vmem:[%s3131_s10 + $0x3] ss:$0 sm:$0xff] }
 0x1bc   :  { %v557_v46 = vpop.f32.mrf.mxu1  ;;  %v642_v47 = vpop.f32.mrf.mxu0 }
 0x1bd   :  { %v643_v52 = vadd.f32 %v642_v47, %v554_v44 }
 0x1be   :  { %v2154_v48 = vpop.f32.mrf.mxu1  ;;  %v2173_v49 = vpop.f32.mrf.mxu0 }
 0x1c0   :  { %v645_v50 = vpop.f32.mrf.mxu0 }
 0x1c2   :  { %v2174_v51 = vpop.f32.mrf.mxu0 }
 0x1d8   :  { %v747_v54 = vpop.f32.mrf.mxu1 }
 0x1d9   :  { %v753_v57 = vadd.f32 %v747_v54, %v643_v52  ;;  %v2464_v52 = vld [vmem:[%s3134_s5 + $0xb8] sm:$0xff]  }
 0x1da   :  { %v2193_v58 = vpop.f32.mrf.mxu1 }
 0x1db   :  { %v762_v60 = vadd.f32 %v1823_v55, %v753_v57  ;;  %v2465_v57 = vld [vmem:[%s3134_s5 + $0xb0] sm:$0xff]   ;;  %v2466_v58 = vld [vmem:[%s3135_s8 + $0x38] sm:$0xff]  }
 0x1dc   :  { %v750_v61 = vpop.f32.mrf.mxu1 }
 0x1dd   :  { %v763_v62 = vadd.f32 %v762_v60, %v130_v59  ;;  %v2468_v60 = vld [vmem:[%s3135_s8 + $0x30] sm:$0xff]   ;;  %v2469_v61 = vld [vmem:[%s3134_s5 + $0xa0] sm:$0xff]  }
 0x1de   :  { %v2194_v63 = vpop.f32.mrf.mxu1 }
 0x1df   :  { %v2877_v1 = vmax.f32 %v763_v62, 0.0  ;;  %v2470_v62 = vld [vmem:[%s3135_s8 + $0x28] sm:$0xff]   ;;  %v2471_v63 = vld [vmem:[%s3134_s5 + $0x98] sm:$0xff]  }
 0x1e1   :  { %v2884_v3 = vpack.c.bf16 %v2877_v1, %v2877_v1  ;;  %v766_v4 = vrot.slane %v2877_v1, 7  ;;  %v769_v13 = vrot.slane %v2877_v1, 1 }
 0x1e3   :  { %2212 = vmatmul.mubr.bf16.vlgmr.msra.gmra.mxu0 %v2884_v3  ;;  %v767_v56 = vmul.f32 %v766_v4, %v2759_v8  ;;  %v770_v15 = vmul.f32 %v2796_v24, %v769_v13  ;;  %v2473_v4 = vld [vmem:[%s3134_s5 + $0x90] sm:$0xff]  }
 0x1e4   :  { %2236 = vmatpush3.bf16.msra.mxu0 %v2439_v2  ;;  %2251 = vmatprep.mubr.msk.bf16.mxu0 %vm2493_vm0, %v2492_v0  ;;  %v2472_v2 = vld [vmem:[%s3135_s8 + $0x20] sm:$0xff]  }
 0x1e5   :  { %2237 = vmatprep.subr.bf16.mxu0 %v2492_v0  ;;  %v768_v6 = vpack.c.bf16 %v767_v56, %v767_v56  ;;  %v771_v16 = vpack.c.bf16 %v770_v15, %v770_v15  ;;  %v2474_v56 = vld [vmem:[%s3135_s8 + $0x18] sm:$0xff]  }
 0x1e6   :  { %v2484_v15 = vld [vmem:[%s3137_s9 + $0x18] sm:$0xff]  }
 0x1e7   :  { %2232 = vmatmul.mubr.bf16.vlgmr.msra.gmra.mxu1 %v768_v6  ;;  %v2476_v6 = vld [vmem:[%s3135_s8 + $0x10] sm:$0xff]  }
 0x1e8   :  { %2238 = vmatpush3.bf16.msra.mxu0 %v2441_v5  ;;  %2271 = vmatprep.mubr.msk.bf16.mxu1 %vm2493_vm0, %v2492_v0  ;;  %v2475_v5 = vld [vmem:[%s3134_s5 + $0x88] sm:$0xff]  }
 0x1e9   :  { %2239 = vmatprep.subr.bf16.mxu0 %v2492_v0  ;;  %2256 = vmatpush3.bf16.msra.mxu1 %v2448_v17  ;;  %v2483_v17 = vld [vmem:[%s3136_s7 + $0x20] sm:$0xff]  }
 0x1ea   :  { %2257 = vmatprep.subr.bf16.mxu1 %v2492_v0 }
 0x1ec   :  { %2240 = vmatpush3.bf16.msra.mxu0 %v2442_v7 }
 0x1ed   :  { %2241 = vmatprep.subr.bf16.mxu0 %v2492_v0  ;;  %2258 = vmatpush3.bf16.msra.mxu1 %v2449_v18  ;;  %v2485_v18 = vld [vmem:[%s3136_s7 + $0x18] sm:$0xff]  }
 0x1ee   :  { %2259 = vmatprep.subr.bf16.mxu1 %v2492_v0 }
 0x1f0   :  { %2242 = vmatpush3.bf16.msra.mxu0 %v2443_v9  ;;  %v2477_v9 = vld [vmem:[%s3134_s5 + $0x80] sm:$0xff]  }
 0x1f1   :  { %2243 = vmatprep.subr.bf16.mxu0 %v2492_v0  ;;  %2260 = vmatpush3.bf16.msra.mxu1 %v2451_v22  ;;  %v2489_v22 = vld [vmem:[%s3136_s7 + $0x8] sm:$0xff]  }
 0x1f2   :  { %2261 = vmatprep.subr.bf16.mxu1 %v2492_v0 }
 0x1f4   :  { %2244 = vmatpush3.bf16.msra.mxu0 %v2444_v10  ;;  %v2478_v10 = vld [vmem:[%s3135_s8 + $0x8] sm:$0xff]  }
 0x1f5   :  { %2245 = vmatprep.subr.bf16.mxu0 %v2492_v0  ;;  %2262 = vmatpush3.bf16.msra.mxu1 %v2453_v25  ;;  %v2491_v25 = vld [vmem:[%s3136_s7] sm:$0xff]  }
 0x1f6   :  { %2263 = vmatprep.subr.bf16.mxu1 %v2492_v0 }
 0x1f8   :  { %2246 = vmatpush3.bf16.msra.mxu0 %v2445_v11 }
 0x1f9   :  { %2247 = vmatprep.subr.bf16.mxu0 %v2492_v0  ;;  %2264 = vmatpush3.bf16.msra.mxu1 %v2455_v27 }
 0x1fa   :  { %2265 = vmatprep.subr.bf16.mxu1 %v2492_v0 }
 0x1fc   :  { %2248 = vmatpush3.bf16.msra.mxu0 %v2446_v12  ;;  %v2479_v12 = vld [vmem:[%s3135_s8] sm:$0xff]  }
 0x1fd   :  { %2249 = vmatprep.subr.bf16.mxu0 %v2492_v0  ;;  %2266 = vmatpush3.bf16.msra.mxu1 %v2457_v29 }
 0x1fe   :  { %2267 = vmatprep.subr.bf16.mxu1 %v2492_v0 }
 0x200   :  { %2250 = vmatpush3.bf16.msra.mxu0 %v2447_v14  ;;  %v2481_v14 = vld [vmem:[%s3136_s7 + $0x30] sm:$0xff]  }
 0x201   :  { %2275 = vmatprep.subr.bf16.mxu0 %v2492_v0  ;;  %2268 = vmatpush3.bf16.msra.mxu1 %v2459_v30 }
 0x202   :  { %2269 = vmatprep.subr.bf16.mxu1 %v2492_v0 }
 0x203   :  { %2252 = vmatmul.mubr.bf16.vlgmr.msra.gmra.mxu0 %v771_v16  ;;  %v2486_v16 = vld [vmem:[%s3137_s9 + $0x10] sm:$0xff]  }
 0x204   :  { %2291 = vmatprep.mubr.msk.bf16.mxu0 %vm2493_vm0, %v2492_v0  ;;  %2276 = vmatpush3.bf16.msra.mxu0 %v2450_v20  ;;  %v2487_v20 = vld [vmem:[%s3136_s7 + $0x10] sm:$0xff]  }
 0x205   :  { %2277 = vmatprep.subr.bf16.mxu0 %v2492_v0  ;;  %2270 = vmatpush3.bf16.msra.mxu1 %v2461_v32 }
 0x206   :  { %2295 = vmatprep.subr.bf16.mxu1 %v2492_v0 }
 0x208   :  { %2278 = vmatpush3.bf16.msra.mxu0 %v2452_v21  ;;  %v2488_v21 = vld [vmem:[%s3137_s9 + $0x8] sm:$0xff]  }
 0x209   :  { %2279 = vmatprep.subr.bf16.mxu0 %v2492_v0 }
 0x20c   :  { %2280 = vmatpush3.bf16.msra.mxu0 %v2454_v23  ;;  %v2490_v23 = vld [vmem:[%s3137_s9] sm:$0xff]  }
 0x20d   :  { %2281 = vmatprep.subr.bf16.mxu0 %v2492_v0 }
 0x210   :  { %2282 = vmatpush3.bf16.msra.mxu0 %v2456_v26 }
 0x211   :  { %2283 = vmatprep.subr.bf16.mxu0 %v2492_v0 }
 0x214   :  { %2284 = vmatpush3.bf16.msra.mxu0 %v2458_v28 }
 0x215   :  { %2285 = vmatprep.subr.bf16.mxu0 %v2492_v0 }
 0x218   :  { %2286 = vmatpush3.bf16.msra.mxu0 %v2460_v31 }
 0x219   :  { %2287 = vmatprep.subr.bf16.mxu0 %v2492_v0 }
 0x21c   :  { %2288 = vmatpush3.bf16.msra.mxu0 %v2462_v33 }
 0x21d   :  { %2289 = vmatprep.subr.bf16.mxu0 %v2492_v0 }
 0x220   :  { %2290 = vmatpush3.bf16.msra.mxu0 %v2463_v34 }
 0x221   :  { %2315 = vmatprep.subr.bf16.mxu0 %v2492_v0 }
 0x2a3   :  { %v887_v35 = vpop.f32.mrf.mxu0 }
 0x2a5   :  { %v2213_v36 = vpop.f32.mrf.mxu0 }
 0x2a7   :  { %v890_v37 = vpop.f32.mrf.mxu0  ;;  %v975_v38 = vpop.f32.mrf.mxu1 }
 0x2a8   :  { %v976_v43 = vadd.f32 %v975_v38, %v887_v35 }
 0x2a9   :  { %v2214_v39 = vpop.f32.mrf.mxu0  ;;  %v2233_v40 = vpop.f32.mrf.mxu1 }
 0x2ab   :  { %v978_v41 = vpop.f32.mrf.mxu1 }
 0x2ad   :  { %v2234_v42 = vpop.f32.mrf.mxu1 }
 0x2c3   :  { %v1080_v44 = vpop.f32.mrf.mxu0 }
 0x2c4   :  { %v1086_v46 = vadd.f32 %v1080_v44, %v976_v43 }
 0x2c5   :  { %v2253_v47 = vpop.f32.mrf.mxu0 }
 0x2c6   :  { %v1095_v48 = vadd.f32 %v1881_v45, %v1086_v46 }
 0x2c7   :  { %v1083_v49 = vpop.f32.mrf.mxu0 }
 0x2c8   :  { %v1096_v50 = vmax.f32 %v1095_v48, 0.0 }
 0x2c9   :  { %v2254_v51 = vpop.f32.mrf.mxu0 }
 0x2ca   :  { %v1098_v53 = vrot.slane %v1096_v50, 7  ;;  %v1097_v54 = vpack.c.bf16 %v1096_v50, %v1096_v50  ;;  %v1101_v7 = vrot.slane %v1096_v50, 1 }
 0x2cc   :  { %2272 = vmatmul.mubr.bf16.vlgmr.msra.gmra.mxu1 %v1097_v54  ;;  %v1099_v55 = vmul.f32 %v1098_v53, %v2759_v8  ;;  %v2467_v8 = vld [vmem:[%s3134_s5 + $0xa8] sm:$0xff]   ;;  %v1102_v11 = vmul.f32 %v2796_v24, %v1101_v7  ;;  %v2480_v24 = vld [vmem:[%s3136_s7 + $0x38] sm:$0xff]   ;;  %v1962_v53 = vld [vmem:[%s3131_s10 + $0x5] ss:$0 sm:$0xff] }
 0x2cd   :  { %2296 = vmatpush3.bf16.msra.mxu1 %v2464_v52  ;;  %2311 = vmatprep.mubr.msk.bf16.mxu1 %vm2493_vm0, %v2492_v0 }
 0x2ce   :  { %2297 = vmatprep.subr.bf16.mxu1 %v2492_v0  ;;  %v1100_v59 = vpack.c.bf16 %v1099_v55, %v1099_v55  ;;  %v1103_v13 = vpack.c.bf16 %v1102_v11, %v1102_v11 }
 0x2d0   :  { %2292 = vmatmul.mubr.bf16.vlgmr.msra.gmra.mxu0 %v1100_v59 }
 0x2d1   :  { %2298 = vmatpush3.bf16.msra.mxu1 %v2465_v57  ;;  %2316 = vmatpush3.bf16.msra.mxu0 %v2466_v58 }
 0x2d2   :  { %2299 = vmatprep.subr.bf16.mxu1 %v2492_v0  ;;  %2317 = vmatprep.subr.bf16.mxu0 %v2492_v0 }
 0x2d3   :  { %2331 = vmatprep.mubr.msk.bf16.mxu0 %vm2493_vm0, %v2492_v0 }
 0x2d5   :  { %2300 = vmatpush3.bf16.msra.mxu1 %v2467_v8  ;;  %2318 = vmatpush3.bf16.msra.mxu0 %v2468_v60 }
 0x2d6   :  { %2301 = vmatprep.subr.bf16.mxu1 %v2492_v0  ;;  %2319 = vmatprep.subr.bf16.mxu0 %v2492_v0 }
 0x2d9   :  { %2302 = vmatpush3.bf16.msra.mxu1 %v2469_v61  ;;  %2320 = vmatpush3.bf16.msra.mxu0 %v2470_v62 }
 0x2da   :  { %2303 = vmatprep.subr.bf16.mxu1 %v2492_v0  ;;  %2321 = vmatprep.subr.bf16.mxu0 %v2492_v0 }
 0x2dd   :  { %2304 = vmatpush3.bf16.msra.mxu1 %v2471_v63  ;;  %2322 = vmatpush3.bf16.msra.mxu0 %v2472_v2 }
 0x2de   :  { %2305 = vmatprep.subr.bf16.mxu1 %v2492_v0  ;;  %2323 = vmatprep.subr.bf16.mxu0 %v2492_v0 }
 0x2e1   :  { %2306 = vmatpush3.bf16.msra.mxu1 %v2473_v4  ;;  %2324 = vmatpush3.bf16.msra.mxu0 %v2474_v56 }
 0x2e2   :  { %2307 = vmatprep.subr.bf16.mxu1 %v2492_v0  ;;  %2325 = vmatprep.subr.bf16.mxu0 %v2492_v0 }
 0x2e5   :  { %2308 = vmatpush3.bf16.msra.mxu1 %v2475_v5  ;;  %2326 = vmatpush3.bf16.msra.mxu0 %v2476_v6 }
 0x2e6   :  { %2309 = vmatprep.subr.bf16.mxu1 %v2492_v0  ;;  %2327 = vmatprep.subr.bf16.mxu0 %v2492_v0 }
 0x2e9   :  { %2310 = vmatpush3.bf16.msra.mxu1 %v2477_v9  ;;  %2328 = vmatpush3.bf16.msra.mxu0 %v2478_v10 }
 0x2ea   :  { %2329 = vmatprep.subr.bf16.mxu0 %v2492_v0  ;;  %2335 = vmatprep.subr.bf16.mxu1 %v2492_v0 }
 0x2ec   :  { %2312 = vmatmul.mubr.bf16.vlgmr.msra.gmra.mxu1 %v1103_v13 }
 0x2ed   :  { %2330 = vmatpush3.bf16.msra.mxu0 %v2479_v12  ;;  %2351 = vmatprep.mubr.msk.bf16.mxu1 %vm2493_vm0, %v2492_v0 }
 0x2ee   :  { %2355 = vmatprep.subr.bf16.mxu0 %v2492_v0  ;;  %2336 = vmatpush3.bf16.msra.mxu1 %v2480_v24 }
 0x2ef   :  { %2337 = vmatprep.subr.bf16.mxu1 %v2492_v0 }
 0x2f0   :  { %2332 = vmatmul.mubr.bf16.vlgmr.msra.gmra.mxu0 %v2884_v3  ;;  %v2482_v3 = vld [vmem:[%s3136_s7 + $0x28] sm:$0xff]  }
 0x2f1   :  { %2363 = vmatprep.mubr.msk.bf16.mxu0 %vm2493_vm0, %v2492_v0  ;;  %2356 = vmatpush3.bf16.msra.mxu0 %v2484_v15 }
 0x2f2   :  { %2338 = vmatpush3.bf16.msra.mxu1 %v2481_v14  ;;  %2357 = vmatprep.subr.bf16.mxu0 %v2492_v0 }
 0x2f3   :  { %2339 = vmatprep.subr.bf16.mxu1 %v2492_v0 }
 0x2f5   :  { %2358 = vmatpush3.bf16.msra.mxu0 %v2486_v16 }
 0x2f6   :  { %2340 = vmatpush3.bf16.msra.mxu1 %v2482_v3  ;;  %2359 = vmatprep.subr.bf16.mxu0 %v2492_v0 }
 0x2f7   :  { %2341 = vmatprep.subr.bf16.mxu1 %v2492_v0 }
 0x2f9   :  { %2360 = vmatpush3.bf16.msra.mxu0 %v2488_v21 }
 0x2fa   :  { %2342 = vmatpush3.bf16.msra.mxu1 %v2483_v17  ;;  %2361 = vmatprep.subr.bf16.mxu0 %v2492_v0 }
 0x2fb   :  { %2343 = vmatprep.subr.bf16.mxu1 %v2492_v0 }
 0x2fd   :  { %2362 = vmatpush3.bf16.msra.mxu0 %v2490_v23 }
 0x2fe   :  { %2344 = vmatpush3.bf16.msra.mxu1 %v2485_v18 }
 0x2ff   :  { %2345 = vmatprep.subr.bf16.mxu1 %v2492_v0 }
 0x300   :  { %2364 = vmatmul.mubr.msk.bf16.vlgmr.msra.gmra.mxu0 %vm91_vm1, %v2613_v19 }
 0x302   :  { %2346 = vmatpush3.bf16.msra.mxu1 %v2487_v20 }
 0x303   :  { %2347 = vmatprep.subr.bf16.mxu1 %v2492_v0 }
 0x306   :  { %2348 = vmatpush3.bf16.msra.mxu1 %v2489_v22 }
 0x307   :  { %2349 = vmatprep.subr.bf16.mxu1 %v2492_v0  ;;  %v1939_v0 = vld [vmem:[%s3131_s10 + $0x4] ss:$0 sm:$0xff] }
 0x30a   :  { %2350 = vmatpush3.bf16.msra.mxu1 %v2491_v25 }
 0x38c   :  { %v1219_v26 = vpop.f32.mrf.mxu1 }
 0x38e   :  { %v2273_v27 = vpop.f32.mrf.mxu1 }
 0x390   :  { %v1222_v28 = vpop.f32.mrf.mxu1  ;;  %v1307_v29 = vpop.f32.mrf.mxu0 }
 0x391   :  { %v1308_v34 = vadd.f32 %v1307_v29, %v1219_v26 }
 0x392   :  { %v2274_v30 = vpop.f32.mrf.mxu1  ;;  %v2293_v31 = vpop.f32.mrf.mxu0 }
 0x394   :  { %v1310_v32 = vpop.f32.mrf.mxu0 }
 0x396   :  { %v2294_v33 = vpop.f32.mrf.mxu0 }
 0x3ac   :  { %v1412_v35 = vpop.f32.mrf.mxu1 }
 0x3ad   :  { %v1418_v36 = vadd.f32 %v1412_v35, %v1308_v34 }
 0x3ae   :  { %v2313_v37 = vpop.f32.mrf.mxu1 }
 0x3af   :  { %v1427_v38 = vadd.f32 %v1939_v0, %v1418_v36 }
 0x3b0   :  { %v1415_v39 = vpop.f32.mrf.mxu1  ;;  %v1545_v19 = vpop.f32.mrf.mxu0 }
 0x3b1   :  { %v1428_v40 = vadd.f32 %v1427_v38, %v2877_v1 }
 0x3b2   :  { %v2314_v41 = vpop.f32.mrf.mxu1  ;;  %v2333_v42 = vpop.f32.mrf.mxu0 }
 0x3b3   :  { %v1429_v43 = vmax.f32 %v1428_v40, 0.0 }
 0x3b4   :  { %v1548_v44 = vpop.f32.mrf.mxu0 }
 0x3b5   :  { %v1430_v45 = vpack.c.bf16 %v1429_v43, %v1429_v43 }
 0x3b6   :  { %v2334_v46 = vpop.f32.mrf.mxu0 }
 0x3b7   :  { %2352 = vmatmul.mubr.bf16.vlgmr.msra.gmra.mxu1 %v1430_v45 }
 0x3c0   :  { %v1705_v47 = vpop.f32.mrf.mxu0 }
 0x3c2   :  { %v2365_v48 = vpop.f32.mrf.mxu0 }
 0x3c4   :  { %v1708_v49 = vpop.f32.mrf.mxu0 }
 0x3c6   :  { %v2366_v50 = vpop.f32.mrf.mxu0 }
 0x477   :  { %v1633_v51 = vpop.f32.mrf.mxu1 }
 0x478   :  { %v1634_v52 = vadd.f32 %v1633_v51, %v1545_v19 }
 0x479   :  { %v2353_v54 = vpop.f32.mrf.mxu1 }
 0x47a   :  { %v1711_v55 = vadd.f32 %v1705_v47, %v1634_v52 }
 0x47b   :  { %v1636_v1 = vpop.f32.mrf.mxu1 }
 0x47c   :  { %v1720_v57 = vadd.f32 %v1962_v53, %v1711_v55 }
 0x47d   :  { %v2354_v58 = vpop.f32.mrf.mxu1 }
 0x47e   :  { %v1721_v59 = vmax.f32 %v1720_v57, 0.0 }
 0x480   :  { %1722 = vst [vmem:[%s3138_s12] sm:$0xff] %v1721_v59 }

</bundles_post_ra>
